<compile_context>
chip_gen: v7x
topology: tpu7x:2x2x1
jax: 0.10.0
libtpu: 0.0.40
codegen_flags: <defaults>
</compile_context>

<pallas_src>
import jax
import jax.numpy as jnp
from jax.experimental import pallas as pl
from jax.experimental.pallas import tpu as pltpu

IN_FEATS = 4
HIDDEN = 100
OUT = 3
HIDDEN_PAD = 128   # lane-dense hidden width
OUT_PAD = 128      # lane-dense logits width


def _mlp_kernel(x_ref, w1_ref, b1_ref, w2_ref, b2_ref, w3_ref, b3_ref,
                z_ref, y_ref, s1_ref, s2_ref):
    x = x_ref[...]                                            # (TB, 4)

    # fc1: (TB,4) @ (4,128) + (1,128)
    a1 = jnp.dot(x, w1_ref[...], preferred_element_type=jnp.float32) + b1_ref[...]
    s1_ref[...] = jnp.maximum(a1, 0.0)                        # S_1 = relu(fc1(x))

    # fc2 applied to the PRE-ReLU activation a1 (exact PyTorch-code semantics)
    a2 = jnp.dot(a1, w2_ref[...], preferred_element_type=jnp.float32) + b2_ref[...]
    s2_ref[...] = jnp.maximum(a2, 0.0)                        # S_2 = relu(fc2(a1))

    # fc3 applied to the PRE-ReLU activation a2
    z = jnp.dot(a2, w3_ref[...], preferred_element_type=jnp.float32) + b3_ref[...]
    z_ref[...] = z                                            # padded logits (TB, 128)

    # softmax over the 3 valid lanes; padded lanes masked to -inf so they
    # contribute nothing to the max or the denominator.
    col = jax.lax.broadcasted_iota(jnp.int32, z.shape, 1)
    zm = jnp.where(col < OUT, z, -jnp.inf)
    zmax = jnp.max(zm, axis=1, keepdims=True)
    e = jnp.exp(zm - zmax)                                    # padded lanes -> 0
    denom = jnp.sum(e, axis=1, keepdims=True)
    y_ref[...] = e * pl.reciprocal(denom, approx=False)       # EUP slot, VPU stays free


def _round_up(n, m):
    return ((n + m - 1) // m) * m


def net_forward(x, params, *, tile_b=256):
    """x: (B, 4) float32. params: dict of (in,out)-transposed weights / (1,out) biases.

    Returns (z, y_pred, [S_1, S_2]) with logical (unpadded) shapes
    (B,3), (B,3), (B,100), (B,100).
    """
    B = x.shape[0]
    # batch tile: multiple of 8, capped so tiny batches don't over-pad.
    tile_b = max(8, min(tile_b, _round_up(max(B, 1), 8)))
    B_pad = _round_up(B, tile_b)
    if B_pad != B:
        x = jnp.pad(x, ((0, B_pad - B), (0, 0)))

    # Zero-pad weights/biases to lane-dense 128 widths (keeps the math exact:
    # padded columns/rows are zero, so valid outputs are unchanged and padded
    # output lanes are exactly zero).
    w1 = jnp.pad(params["w1"], ((0, 0), (0, HIDDEN_PAD - HIDDEN)))                       # (4,128)
    b1 = jnp.pad(params["b1"], ((0, 0), (0, HIDDEN_PAD - HIDDEN)))                       # (1,128)
    w2 = jnp.pad(params["w2"], ((0, HIDDEN_PAD - HIDDEN), (0, HIDDEN_PAD - HIDDEN)))     # (128,128)
    b2 = jnp.pad(params["b2"], ((0, 0), (0, HIDDEN_PAD - HIDDEN)))                       # (1,128)
    w3 = jnp.pad(params["w3"], ((0, HIDDEN_PAD - HIDDEN), (0, OUT_PAD - OUT)))           # (128,128)
    b3 = jnp.pad(params["b3"], ((0, 0), (0, OUT_PAD - OUT)))                             # (1,128)

    grid = (B_pad // tile_b,)

    batch_map = lambda i: (i, 0)   # tiled along the batch axis
    const_map = lambda i: (0, 0)   # weights stay resident across grid steps

    in_specs = [
        pl.BlockSpec((tile_b, IN_FEATS), batch_map),
        pl.BlockSpec(w1.shape, const_map),
        pl.BlockSpec(b1.shape, const_map),
        pl.BlockSpec(w2.shape, const_map),
        pl.BlockSpec(b2.shape, const_map),
        pl.BlockSpec(w3.shape, const_map),
        pl.BlockSpec(b3.shape, const_map),
    ]
    out_specs = (
        pl.BlockSpec((tile_b, OUT_PAD), batch_map),      # z (padded)
        pl.BlockSpec((tile_b, OUT_PAD), batch_map),      # y_pred (padded)
        pl.BlockSpec((tile_b, HIDDEN_PAD), batch_map),   # S_1 (padded)
        pl.BlockSpec((tile_b, HIDDEN_PAD), batch_map),   # S_2 (padded)
    )
    out_shape = (
        jax.ShapeDtypeStruct((B_pad, OUT_PAD), jnp.float32),
        jax.ShapeDtypeStruct((B_pad, OUT_PAD), jnp.float32),
        jax.ShapeDtypeStruct((B_pad, HIDDEN_PAD), jnp.float32),
        jax.ShapeDtypeStruct((B_pad, HIDDEN_PAD), jnp.float32),
    )

    z, y_pred, s1, s2 = pl.pallas_call(
        _mlp_kernel,
        out_shape=out_shape,
        grid=grid,
        in_specs=in_specs,
        out_specs=out_specs,
        compiler_params=pltpu.CompilerParams(
            dimension_semantics=("parallel",)),   # shard batch steps across TCs (v7x)
    )(x, w1, b1, w2, b2, w3, b3)

    # slice back to logical shapes
    return (z[:B, :OUT], y_pred[:B, :OUT], [s1[:B, :HIDDEN], s2[:B, :HIDDEN]])


def init_params(key):
    """Deterministic init mimicking nn.Linear's U(-1/sqrt(fan_in), 1/sqrt(fan_in))."""
    def linear(key, fan_in, fan_out):
        kw, kb = jax.random.split(key)
        bound = 1.0 / jnp.sqrt(fan_in)
        # stored already transposed: (fan_in, fan_out)
        w = jax.random.uniform(kw, (fan_in, fan_out), jnp.float32, -bound, bound)
        b = jax.random.uniform(kb, (1, fan_out), jnp.float32, -bound, bound)
        return w, b

    k1, k2, k3 = jax.random.split(key, 3)
    w1, b1 = linear(k1, IN_FEATS, HIDDEN)
    w2, b2 = linear(k2, HIDDEN, HIDDEN)
    w3, b3 = linear(k3, HIDDEN, OUT)
    return {"w1": w1, "b1": b1, "w2": w2, "b2": b2, "w3": w3, "b3": b3}


def _reference(x, params):
    a1 = x @ params["w1"] + params["b1"]
    a2 = a1 @ params["w2"] + params["b2"]
    z = a2 @ params["w3"] + params["b3"]
    y = jax.nn.softmax(z, axis=1)
    return z, y, jnp.maximum(a1, 0.0), jnp.maximum(a2, 0.0)


# TODO(synk): the `mathcal_Z is None` dropout branch references the undefined
# attribute `self.dropout` in the original PyTorch module and is therefore not
# translated; the sampled noise in the other branch is dead code in eval mode.

if __name__ == "__main__":
    key = jax.random.PRNGKey(0)
    kp, kx, kx2 = jax.random.split(key, 3)
    params = init_params(kp)

    # small primary run
    B = 8
    x = jax.random.normal(kx, (B, IN_FEATS), dtype=jnp.float32)
    z, y_pred, (s1, s2) = net_forward(x, params)
    jax.block_until_ready((z, y_pred, s1, s2))

    z_ref, y_ref, s1_ref, s2_ref = _reference(x, params)
    assert z.shape == (B, OUT) and y_pred.shape == (B, OUT)
    assert s1.shape == (B, HIDDEN) and s2.shape == (B, HIDDEN)
    assert jnp.allclose(z, z_ref, atol=1e-4), "logits mismatch"
    assert jnp.allclose(y_pred, y_ref, atol=1e-5), "softmax mismatch"
    assert jnp.allclose(s1, s1_ref, atol=1e-4), "S_1 mismatch"
    assert jnp.allclose(s2, s2_ref, atol=1e-4), "S_2 mismatch"

    # exercise the multi-step grid + batch-remainder padding path
    B2 = 20
    x2 = jax.random.normal(kx2, (B2, IN_FEATS), dtype=jnp.float32)
    z2, y2, (s1b, s2b) = net_forward(x2, params, tile_b=8)   # grid=(3,), remainder padded
    jax.block_until_ready((z2, y2, s1b, s2b))
    z2_ref, y2_ref, s1b_ref, s2b_ref = _reference(x2, params)
    assert jnp.allclose(z2, z2_ref, atol=1e-4), "gridded logits mismatch"
    assert jnp.allclose(y2, y2_ref, atol=1e-5), "gridded softmax mismatch"
    assert jnp.allclose(s1b, s1b_ref, atol=1e-4), "gridded S_1 mismatch"
    assert jnp.allclose(s2b, s2b_ref, atol=1e-4), "gridded S_2 mismatch"

    print("KERNEL_OK")
</pallas_src>

<mosaic_0001>
module attributes {stable_mosaic.version = 11 : i64} {
  func.func @_mlp_kernel(%arg0: i32, %arg1: memref<8x4xf32, #tpu.memory_space<vmem>>, %arg2: memref<4x128xf32, #tpu.memory_space<vmem>>, %arg3: memref<1x128xf32, #tpu.memory_space<vmem>>, %arg4: memref<128x128xf32, #tpu.memory_space<vmem>>, %arg5: memref<1x128xf32, #tpu.memory_space<vmem>>, %arg6: memref<128x128xf32, #tpu.memory_space<vmem>>, %arg7: memref<1x128xf32, #tpu.memory_space<vmem>>, %arg8: memref<8x128xf32, #tpu.memory_space<vmem>>, %arg9: memref<8x128xf32, #tpu.memory_space<vmem>>, %arg10: memref<8x128xf32, #tpu.memory_space<vmem>>, %arg11: memref<8x128xf32, #tpu.memory_space<vmem>>) attributes {dimension_semantics = [#tpu.dimension_semantics<parallel>], iteration_bounds = array<i64: 1>, scalar_prefetch = 0 : i64, scratch_operands = 0 : i64, tpu.core_type = #tpu.core_type<tc>, window_params = [{transform_indices = @transform_0, window_bounds = array<i64: 8, 4>}, {pipeline_mode = #tpu.pipeline_mode<synchronous>, transform_indices = @transform_1, window_bounds = array<i64: 4, 128>}, {pipeline_mode = #tpu.pipeline_mode<synchronous>, transform_indices = @transform_2, window_bounds = array<i64: 1, 128>}, {pipeline_mode = #tpu.pipeline_mode<synchronous>, transform_indices = @transform_3, window_bounds = array<i64: 128, 128>}, {pipeline_mode = #tpu.pipeline_mode<synchronous>, transform_indices = @transform_4, window_bounds = array<i64: 1, 128>}, {pipeline_mode = #tpu.pipeline_mode<synchronous>, transform_indices = @transform_5, window_bounds = array<i64: 128, 128>}, {pipeline_mode = #tpu.pipeline_mode<synchronous>, transform_indices = @transform_6, window_bounds = array<i64: 1, 128>}, {transform_indices = @transform_7, window_bounds = array<i64: 8, 128>}, {transform_indices = @transform_8, window_bounds = array<i64: 8, 128>}, {transform_indices = @transform_9, window_bounds = array<i64: 8, 128>}, {transform_indices = @transform_10, window_bounds = array<i64: 8, 128>}]} {
    %c0 = arith.constant 0 : index
    %c0_0 = arith.constant 0 : index
    %0 = vector.load %arg1[%c0, %c0_0] : memref<8x4xf32, #tpu.memory_space<vmem>>, vector<8x4xf32>
    %c0_1 = arith.constant 0 : index
    %c0_2 = arith.constant 0 : index
    %1 = vector.load %arg2[%c0_1, %c0_2] : memref<4x128xf32, #tpu.memory_space<vmem>>, vector<4x128xf32>
    %cst = arith.constant dense<0.000000e+00> : vector<8x128xf32>
    %2 = tpu.matmul %0, %1, %cst {dimension_numbers = #tpu.dot_dimension_numbers<[1], [0], [0], [1], [0, 0, 1, 1], [], []>} : vector<8x4xf32>, vector<4x128xf32>, vector<8x128xf32> -> vector<8x128xf32>
    %c0_3 = arith.constant 0 : index
    %c0_4 = arith.constant 0 : index
    %3 = vector.load %arg3[%c0_3, %c0_4] : memref<1x128xf32, #tpu.memory_space<vmem>>, vector<1x128xf32>
    %4 = vector.broadcast %3 : vector<1x128xf32> to vector<8x128xf32>
    %5 = arith.addf %2, %4 : vector<8x128xf32>
    %cst_5 = arith.constant 0.000000e+00 : f32
    %6 = vector.broadcast %cst_5 : f32 to vector<8x128xf32>
    %7 = arith.maximumf %5, %6 : vector<8x128xf32>
    %c0_6 = arith.constant 0 : index
    %c0_7 = arith.constant 0 : index
    %8 = vector.load %arg10[%c0_6, %c0_7] : memref<8x128xf32, #tpu.memory_space<vmem>>, vector<8x128xf32>
    tpu.vector_store %arg10[%c0_6, %c0_7], %7 {strides = array<i32>} : memref<8x128xf32, #tpu.memory_space<vmem>>, vector<8x128xf32>,
    %c0_8 = arith.constant 0 : index
    %c0_9 = arith.constant 0 : index
    %9 = vector.load %arg4[%c0_8, %c0_9] : memref<128x128xf32, #tpu.memory_space<vmem>>, vector<128x128xf32>
    %cst_10 = arith.constant dense<0.000000e+00> : vector<8x128xf32>
    %10 = tpu.matmul %5, %9, %cst_10 {dimension_numbers = #tpu.dot_dimension_numbers<[1], [0], [0], [1], [0, 0, 1, 1], [], []>} : vector<8x128xf32>, vector<128x128xf32>, vector<8x128xf32> -> vector<8x128xf32>
    %c0_11 = arith.constant 0 : index
    %c0_12 = arith.constant 0 : index
    %11 = vector.load %arg5[%c0_11, %c0_12] : memref<1x128xf32, #tpu.memory_space<vmem>>, vector<1x128xf32>
    %12 = vector.broadcast %11 : vector<1x128xf32> to vector<8x128xf32>
    %13 = arith.addf %10, %12 : vector<8x128xf32>
    %cst_13 = arith.constant 0.000000e+00 : f32
    %14 = vector.broadcast %cst_13 : f32 to vector<8x128xf32>
    %15 = arith.maximumf %13, %14 : vector<8x128xf32>
    %c0_14 = arith.constant 0 : index
    %c0_15 = arith.constant 0 : index
    %16 = vector.load %arg11[%c0_14, %c0_15] : memref<8x128xf32, #tpu.memory_space<vmem>>, vector<8x128xf32>
    tpu.vector_store %arg11[%c0_14, %c0_15], %15 {strides = array<i32>} : memref<8x128xf32, #tpu.memory_space<vmem>>, vector<8x128xf32>,
    %c0_16 = arith.constant 0 : index
    %c0_17 = arith.constant 0 : index
    %17 = vector.load %arg6[%c0_16, %c0_17] : memref<128x128xf32, #tpu.memory_space<vmem>>, vector<128x128xf32>
    %cst_18 = arith.constant dense<0.000000e+00> : vector<8x128xf32>
    %18 = tpu.matmul %13, %17, %cst_18 {dimension_numbers = #tpu.dot_dimension_numbers<[1], [0], [0], [1], [0, 0, 1, 1], [], []>} : vector<8x128xf32>, vector<128x128xf32>, vector<8x128xf32> -> vector<8x128xf32>
    %c0_19 = arith.constant 0 : index
    %c0_20 = arith.constant 0 : index
    %19 = vector.load %arg7[%c0_19, %c0_20] : memref<1x128xf32, #tpu.memory_space<vmem>>, vector<1x128xf32>
    %20 = vector.broadcast %19 : vector<1x128xf32> to vector<8x128xf32>
    %21 = arith.addf %18, %20 : vector<8x128xf32>
    %c0_21 = arith.constant 0 : index
    %c0_22 = arith.constant 0 : index
    %22 = vector.load %arg8[%c0_21, %c0_22] : memref<8x128xf32, #tpu.memory_space<vmem>>, vector<8x128xf32>
    tpu.vector_store %arg8[%c0_21, %c0_22], %21 {strides = array<i32>} : memref<8x128xf32, #tpu.memory_space<vmem>>, vector<8x128xf32>,
    %23 = tpu.iota {dimensions = array<i32: 1>} : vector<8x128xi32>
    %c3_i32 = arith.constant 3 : i32
    %24 = vector.broadcast %c3_i32 : i32 to vector<8x128xi32>
    %25 = arith.cmpi slt, %23, %24 : vector<8x128xi32>
    %cst_23 = arith.constant 0xFF800000 : f32
    %26 = vector.broadcast %cst_23 : f32 to vector<8x128xf32>
    %27 = arith.select %25, %21, %26 : vector<8x128xi1>, vector<8x128xf32>
    %cst_24 = arith.constant dense<0xFF800000> : vector<8xf32>
    %28 = vector.multi_reduction <maximumf>, %27, %cst_24 [1] : vector<8x128xf32> to vector<8xf32>
    %29 = vector.shape_cast %28 : vector<8xf32> to vector<8x1xf32>
    %30 = vector.broadcast %29 : vector<8x1xf32> to vector<8x128xf32>
    %31 = arith.subf %27, %30 : vector<8x128xf32>
    %32 = math.exp %31 : vector<8x128xf32>
    %cst_25 = arith.constant dense<0.000000e+00> : vector<8xf32>
    %33 = vector.multi_reduction <add>, %32, %cst_25 [1] : vector<8x128xf32> to vector<8xf32>
    %34 = vector.shape_cast %33 : vector<8xf32> to vector<8x1xf32>
    %35 = tpu.reciprocal %34 : vector<8x1xf32> -> vector<8x1xf32>
    %36 = vector.broadcast %35 : vector<8x1xf32> to vector<8x128xf32>
    %37 = arith.mulf %32, %36 : vector<8x128xf32>
    %c0_26 = arith.constant 0 : index
    %c0_27 = arith.constant 0 : index
    %38 = vector.load %arg9[%c0_26, %c0_27] : memref<8x128xf32, #tpu.memory_space<vmem>>, vector<8x128xf32>
    tpu.vector_store %arg9[%c0_26, %c0_27], %37 {strides = array<i32>} : memref<8x128xf32, #tpu.memory_space<vmem>>, vector<8x128xf32>,
    return
  }
  func.func @transform_0(%arg0: i32) -> (i32, i32) {
    %c0_i32 = arith.constant 0 : i32
    %c0_i32_0 = arith.constant 0 : i32
    return %arg0, %c0_i32 : i32, i32
  }
  func.func @transform_1(%arg0: i32) -> (i32, i32) {
    %c0_i32 = arith.constant 0 : i32
    %c0_i32_0 = arith.constant 0 : i32
    %c0_i32_1 = arith.constant 0 : i32
    return %c0_i32, %c0_i32_0 : i32, i32
  }
  func.func @transform_2(%arg0: i32) -> (i32, i32) {
    %c0_i32 = arith.constant 0 : i32
    %c0_i32_0 = arith.constant 0 : i32
    %c0_i32_1 = arith.constant 0 : i32
    return %c0_i32, %c0_i32_0 : i32, i32
  }
  func.func @transform_3(%arg0: i32) -> (i32, i32) {
    %c0_i32 = arith.constant 0 : i32
    %c0_i32_0 = arith.constant 0 : i32
    %c0_i32_1 = arith.constant 0 : i32
    return %c0_i32, %c0_i32_0 : i32, i32
  }
  func.func @transform_4(%arg0: i32) -> (i32, i32) {
    %c0_i32 = arith.constant 0 : i32
    %c0_i32_0 = arith.constant 0 : i32
    %c0_i32_1 = arith.constant 0 : i32
    return %c0_i32, %c0_i32_0 : i32, i32
  }
  func.func @transform_5(%arg0: i32) -> (i32, i32) {
    %c0_i32 = arith.constant 0 : i32
    %c0_i32_0 = arith.constant 0 : i32
    %c0_i32_1 = arith.constant 0 : i32
    return %c0_i32, %c0_i32_0 : i32, i32
  }
  func.func @transform_6(%arg0: i32) -> (i32, i32) {
    %c0_i32 = arith.constant 0 : i32
    %c0_i32_0 = arith.constant 0 : i32
    %c0_i32_1 = arith.constant 0 : i32
    return %c0_i32, %c0_i32_0 : i32, i32
  }
  func.func @transform_7(%arg0: i32) -> (i32, i32) {
    %c0_i32 = arith.constant 0 : i32
    %c0_i32_0 = arith.constant 0 : i32
    return %arg0, %c0_i32 : i32, i32
  }
  func.func @transform_8(%arg0: i32) -> (i32, i32) {
    %c0_i32 = arith.constant 0 : i32
    %c0_i32_0 = arith.constant 0 : i32
    return %arg0, %c0_i32 : i32, i32
  }
  func.func @transform_9(%arg0: i32) -> (i32, i32) {
    %c0_i32 = arith.constant 0 : i32
    %c0_i32_0 = arith.constant 0 : i32
    return %arg0, %c0_i32 : i32, i32
  }
  func.func @transform_10(%arg0: i32) -> (i32, i32) {
    %c0_i32 = arith.constant 0 : i32
    %c0_i32_0 = arith.constant 0 : i32
    return %arg0, %c0_i32 : i32, i32
  }
}

</mosaic_0001>

<bundles_post_ra>
// kernel: tpu_custom_call.1
= control target key start
LH: loop header
LB: loop body
LE: loop exit
PB: predicated region body
PF: predicated region fallthrough
CT: control target
= control target key end

     0   :  { %16 = vsyncpa [#allocation3], 0  ;;  %s903_s0 = inlined_call_operand.vmem [shape: f32[8,4], index: 0, kind: input, shape index: {}]   ;;  %s904_s1 = inlined_call_operand.vmem [shape: f32[4,128], index: 1, kind: input, shape index: {}]   ;;  %s905_s2 = inlined_call_operand.vmem [shape: f32[1,128], index: 2, kind: input, shape index: {}]   ;;  %s906_s3 = inlined_call_operand.hbm [shape: f32[128,128], index: 3, kind: input, shape index: {}]   ;;  %s907_s4 = inlined_call_operand.vmem [shape: f32[1,128], index: 4, kind: input, shape index: {}]   ;;  %s908_s5 = inlined_call_operand.hbm [shape: f32[128,128], index: 5, kind: input, shape index: {}]   ;;  %s909_s6 = inlined_call_operand.vmem [shape: f32[1,128], index: 6, kind: input, shape index: {}]   ;;  %s910_s7 = inlined_call_operand.hbm [shape: f32[8,128], index: 7, kind: output, shape index: {0}]   ;;  %s911_s8 = inlined_call_operand.hbm [shape: f32[8,128], index: 8, kind: output, shape index: {1}]   ;;  %s912_s9 = inlined_call_operand.hbm [shape: f32[8,128], index: 9, kind: output, shape index: {2}]   ;;  %s913_s10 = inlined_call_operand.hbm [shape: f32[8,128], index: 10, kind: output, shape index: {3}]  }
   0x1   :  { %17 = vsyncpa [#allocation6], 0 }
   0x2   :  { %18 = vsyncpa [#allocation4], 0 }
   0x3   :  { %19 = vsyncpa [#allocation9], 0 }
   0x4   :  { %20 = vsyncpa [#allocation12], 0  ;;  %s731_s13 = smov [#allocation2]   ;;  %s589_s17 = scalar_lea.hbm %s906_s3, 2048 }
   0x5   :  { %s32_s14 = sshll.u32 %s731_s13, 4  ;;  %p590_p0 = scmp.ne.s32.totalorder %s906_s3, %s589_s17  ;;  %s33_s14 = int_to_ptr.vmem [resolvable:$true] %s32_s14 }
   0x6   :  { %p593_p1 = scmp.lt.u32.totalorder %s589_s17, %s906_s3 }
   0x8   :  { %p595_p2 = pnand %p593_p1, %p590_p0 }
   0xa   :  { %598 = shalt.err (!%p595_p2)
}
   0xb   :  { %s599_s22 = scalar_lea.vmem %s33_s14, 2048  ;;  %p604_p4 = scmp.lt.s32.totalorder %s33_s14, %s33_s14 }
   0xc   :  { %p600_p3 = scmp.ne.s32.totalorder %s33_s14, %s599_s22  ;;  %p605_p5 = scmp.lt.s32.totalorder %s599_s22, %s599_s22 }
   0xe   :  { %p606_p6 = por %p605_p5, %p604_p4 }
  0x10   :  { %p607_p7 = pnand %p606_p6, %p600_p3 }
  0x12   :  { %610 = shalt.err (!%p607_p7)
}
  0x13   :  { %s732_s23 = smov 128   ;;  %s733_s24 = smov 8  }
  0x14   :  { %38 = dma.hbm_to_vmem [thread:$0]  %s906_s3, 2048, %s33_s14, [#allocation3], %s732_s23, %s732_s23, %s733_s24  }
  0x15   :  { %s734_s27 = smov [#allocation5]   ;;  %s611_s11 = scalar_lea.hbm %s908_s5, 2048 }
  0x16   :  { %s46_s28 = sshll.u32 %s734_s27, 4  ;;  %p612_p8 = scmp.ne.s32.totalorder %s908_s5, %s611_s11  ;;  %s47_s28 = int_to_ptr.vmem [resolvable:$true] %s46_s28 }
  0x17   :  { %p615_p9 = scmp.lt.u32.totalorder %s611_s11, %s908_s5 }
  0x19   :  { %p617_p10 = pnand %p615_p9, %p612_p8 }
  0x1b   :  { %620 = shalt.err (!%p617_p10)
}
  0x1c   :  { %s621_s17 = scalar_lea.vmem %s47_s28, 2048  ;;  %p626_p12 = scmp.lt.s32.totalorder %s47_s28, %s47_s28 }
  0x1d   :  { %p622_p11 = scmp.ne.s32.totalorder %s47_s28, %s621_s17  ;;  %p627_p13 = scmp.lt.s32.totalorder %s621_s17, %s621_s17 }
  0x1f   :  { %p628_p0 = por %p627_p13, %p626_p12 }
  0x21   :  { %p629_p1 = pnand %p628_p0, %p622_p11 }
  0x23   :  { %632 = shalt.err (!%p629_p1)
}
  0x24   :  { %52 = dma.hbm_to_vmem [thread:$0]  %s908_s5, 2048, %s47_s28, [#allocation6], %s732_s23, %s732_s23, %s733_s24  }
  0x25   :  { %721 = dma.done.wait [#allocation3], 2048  }
  0x26   :  { %722 = vsyncadd [#allocation3], 4294965248 }
  0x27   :  { %723 = dma.done.wait [#allocation6], 2048  }
  0x28   :  { %724 = vsyncadd [#allocation6], 4294965248  ;;  %v735_v0 = vmov 0.0   ;;  %vm736_vm0 = vmmov 0   ;;  %v737_v1 = vmov 0.0|0.0   ;;  %vm74_vm1 = vcmask 1043456  }
  0x29   :  { %451 = vmatprep.subr.mxu0 %v735_v0  ;;  %453 = vmatprep.mubr.msk.f32.mxu0 %vm736_vm0, %v735_v0  ;;  %vm70_vm2 = vcmask 31744   ;;  %v62_v2 = vld [vmem:[%s904_s1] sm:$0xf]  ;;  %v151_v5 = vld [vmem:[#allocation2 + $0x8] sm:$0xff]  ;;  %v152_v6 = vld [vmem:[#allocation2 + $0x10] sm:$0xff]  ;;  %v339_v62 = vlaneseq }
  0x2a   :  { %526 = vmatprep.subr.bf16.mxu1 %v737_v1  ;;  %488 = vmatprep.mubr.msk.f32.mxu1 %vm736_vm0, %v735_v0  ;;  %v61_v3 = vld [vmem:[%s903_s0] sm:$0xff]  ;;  %v153_v7 = vld [vmem:[#allocation2 + $0x18] sm:$0xff]  ;;  %v155_v11 = vld [vmem:[#allocation2 + $0x28] sm:$0xff] }
  0x2b   :  { %v150_v4 = vld [vmem:[#allocation2] sm:$0xff]  ;;  %452 = vmatpush3.msk.msra.mxu0 %vm74_vm1, %v62_v2  ;;  %v530_v9 = vpack.c.bf16 %v153_v7, %v152_v6  ;;  %v156_v13 = vld [vmem:[#allocation2 + $0x30] sm:$0xff]  ;;  %v157_v14 = vld [vmem:[#allocation2 + $0x38] sm:$0xff]  ;;  %v340_v63 = vand.u32 127, %v339_v62 }
  0x2c   :  { %454 = vmatmul.mubr.msk.f32.vlgmr.msra.gmra.mrb[0].mxu0 %vm70_vm2, %v61_v3  ;;  %v527_v8 = vpack.c.bf16 %v151_v5, %v150_v4  ;;  %550 = vmatprep.subr.bf16.mxu0 %v737_v1  ;;  %v154_v10 = vld [vmem:[#allocation2 + $0x20] sm:$0xff]  ;;  %v536_v15 = vpack.c.bf16 %v157_v14, %v156_v13  ;;  %v159_v17 = vld [vmem:[#allocation2 + $0x48] sm:$0xff]  ;;  %v160_v19 = vld [vmem:[#allocation2 + $0x50] sm:$0xff] }
  0x2d   :  { %523 = vmatprep.mubr.msk.f32.mxu0 %vm736_vm0, %v735_v0  ;;  %v533_v12 = vpack.c.bf16 %v155_v11, %v154_v10  ;;  %v158_v16 = vld [vmem:[#allocation2 + $0x40] sm:$0xff]  ;;  %v161_v20 = vld [vmem:[#allocation2 + $0x58] sm:$0xff]  ;;  %v163_v23 = vld [vmem:[#allocation2 + $0x68] sm:$0xff]  ;;  %vm341_vm3 = vcmp.lt.s32.totalorder %v340_v63, 3 }
  0x2e   :  { %528 = vmatpush3.bf16.msra.mxu1 %v527_v8  ;;  %v539_v18 = vpack.c.bf16 %v159_v17, %v158_v16  ;;  %v542_v21 = vpack.c.bf16 %v161_v20, %v160_v19  ;;  %v162_v22 = vld [vmem:[#allocation2 + $0x60] sm:$0xff]  ;;  %v164_v25 = vld [vmem:[#allocation2 + $0x70] sm:$0xff]  ;;  %v165_v26 = vld [vmem:[#allocation2 + $0x78] sm:$0xff] }
  0x2f   :  { %529 = vmatprep.subr.bf16.mxu1 %v737_v1  ;;  %v545_v24 = vpack.c.bf16 %v163_v23, %v162_v22  ;;  %v548_v27 = vpack.c.bf16 %v165_v26, %v164_v25  ;;  %v245_v28 = vld [vmem:[#allocation5] sm:$0xff]  ;;  %v246_v29 = vld [vmem:[#allocation5 + $0x8] sm:$0xff]  ;;  %v247_v30 = vld [vmem:[#allocation5 + $0x10] sm:$0xff] }
  0x30   :  { %v551_v31 = vpack.c.bf16 %v246_v29, %v245_v28  ;;  %v248_v32 = vld [vmem:[#allocation5 + $0x18] sm:$0xff]  ;;  %v249_v34 = vld [vmem:[#allocation5 + $0x20] sm:$0xff]  ;;  %v250_v35 = vld [vmem:[#allocation5 + $0x28] sm:$0xff] }
  0x31   :  { %v554_v33 = vpack.c.bf16 %v248_v32, %v247_v30  ;;  %v557_v36 = vpack.c.bf16 %v250_v35, %v249_v34  ;;  %v251_v37 = vld [vmem:[#allocation5 + $0x30] sm:$0xff]  ;;  %v252_v38 = vld [vmem:[#allocation5 + $0x38] sm:$0xff]  ;;  %v253_v40 = vld [vmem:[#allocation5 + $0x40] sm:$0xff] }
  0x32   :  { %531 = vmatpush3.bf16.msra.mxu1 %v530_v9  ;;  %552 = vmatpush3.bf16.msra.mxu0 %v551_v31  ;;  %v560_v39 = vpack.c.bf16 %v252_v38, %v251_v37  ;;  %v254_v41 = vld [vmem:[#allocation5 + $0x48] sm:$0xff]  ;;  %v255_v43 = vld [vmem:[#allocation5 + $0x50] sm:$0xff]  ;;  %v256_v44 = vld [vmem:[#allocation5 + $0x58] sm:$0xff] }
  0x33   :  { %532 = vmatprep.subr.bf16.mxu1 %v737_v1  ;;  %553 = vmatprep.subr.bf16.mxu0 %v737_v1  ;;  %v563_v42 = vpack.c.bf16 %v254_v41, %v253_v40  ;;  %v566_v45 = vpack.c.bf16 %v256_v44, %v255_v43  ;;  %v257_v46 = vld [vmem:[#allocation5 + $0x60] sm:$0xff]  ;;  %v258_v47 = vld [vmem:[#allocation5 + $0x68] sm:$0xff]  ;;  %v259_v54 = vld [vmem:[#allocation5 + $0x70] sm:$0xff] }
  0x34   :  { %v569_v48 = vpack.c.bf16 %v258_v47, %v257_v46  ;;  %v410_v49 = vld [vmem:[%s905_s2] ss:$0 sm:$0xff]  ;;  %v260_v55 = vld [vmem:[#allocation5 + $0x78] sm:$0xff] }
  0x35   :  { %v572_v56 = vpack.c.bf16 %v260_v55, %v259_v54  ;;  %v413_v57 = vld [vmem:[%s907_s4] ss:$0 sm:$0xff]  ;;  %s738_s4 = smov [#allocation7]  }
  0x36   :  { %534 = vmatpush3.bf16.msra.mxu1 %v533_v12  ;;  %555 = vmatpush3.bf16.msra.mxu0 %v554_v33  ;;  %v414_v0 = vld [vmem:[%s909_s6] ss:$0 sm:$0xff]  ;;  %s359_s24 = sshll.u32 %s738_s4, 4  ;;  %s360_s24 = int_to_ptr.vmem [resolvable:$true] %s359_s24 }
  0x37   :  { %535 = vmatprep.subr.bf16.mxu1 %v737_v1  ;;  %556 = vmatprep.subr.bf16.mxu0 %v737_v1  ;;  %s633_s25 = scalar_lea.vmem %s360_s24, 128  ;;  %p638_p3 = scmp.lt.s32.totalorder %s360_s24, %s360_s24 }
  0x38   :  { %p634_p2 = scmp.ne.s32.totalorder %s360_s24, %s633_s25  ;;  %p639_p4 = scmp.lt.s32.totalorder %s633_s25, %s633_s25 }
  0x3a   :  { %537 = vmatpush3.bf16.msra.mxu1 %v536_v15  ;;  %558 = vmatpush3.bf16.msra.mxu0 %v557_v36  ;;  %p640_p5 = por %p639_p4, %p638_p3 }
  0x3b   :  { %538 = vmatprep.subr.bf16.mxu1 %v737_v1  ;;  %559 = vmatprep.subr.bf16.mxu0 %v737_v1 }
  0x3c   :  { %p641_p6 = pnand %p640_p5, %p634_p2 }
  0x3e   :  { %540 = vmatpush3.bf16.msra.mxu1 %v539_v18  ;;  %561 = vmatpush3.bf16.msra.mxu0 %v560_v39 }
  0x3f   :  { %541 = vmatprep.subr.bf16.mxu1 %v737_v1  ;;  %562 = vmatprep.subr.bf16.mxu0 %v737_v1 }
  0x42   :  { %543 = vmatpush3.bf16.msra.mxu1 %v542_v21  ;;  %564 = vmatpush3.bf16.msra.mxu0 %v563_v42 }
  0x43   :  { %544 = vmatprep.subr.bf16.mxu1 %v737_v1  ;;  %565 = vmatprep.subr.bf16.mxu0 %v737_v1 }
  0x46   :  { %546 = vmatpush3.bf16.msra.mxu1 %v545_v24  ;;  %567 = vmatpush3.bf16.msra.mxu0 %v566_v45 }
  0x47   :  { %547 = vmatprep.subr.bf16.mxu1 %v737_v1  ;;  %568 = vmatprep.subr.bf16.mxu0 %v737_v1 }
  0x4a   :  { %549 = vmatpush3.bf16.msra.mxu1 %v548_v27  ;;  %570 = vmatpush3.bf16.msra.mxu0 %v569_v48 }
  0x4b   :  { %571 = vmatprep.subr.bf16.mxu0 %v737_v1 }
  0x4e   :  { %573 = vmatpush3.bf16.msra.mxu0 %v572_v56 }
  0xff   :  { %v144_v50 = vpop.f32.mrb[0].mxu0 }
 0x100   :  { %v145_v51 = vadd.f32 %v410_v49, %v144_v50  ;;  %v455_v52 = vpop.f32.mrb[1].mxu0 }
 0x102   :  { %v148_v53 = vmax.f32 %v145_v51, 0.0  ;;  %489 = vmatmul.mubr.f32.vlgmr.msra.gmra.mrb[0].mxu1 %v145_v51 }
 0x104   :  { %149 = vst [vmem:[#allocation10] sm:$0xff] %v148_v53 }
 0x1d5   :  { %v239_v58 = vpop.f32.mrb[0].mxu1 }
 0x1d6   :  { %v240_v59 = vadd.f32 %v413_v57, %v239_v58  ;;  %v490_v60 = vpop.f32.mrb[1].mxu1 }
 0x1d8   :  { %v243_v61 = vmax.f32 %v240_v59, 0.0  ;;  %524 = vmatmul.mubr.f32.vlgmr.msra.gmra.mrb[2].mxu0 %v240_v59 }
 0x1da   :  { %244 = vst [vmem:[#allocation11] sm:$0xff] %v243_v61 }
 0x2ab   :  { %v334_v1 = vpop.f32.mrb[2].mxu0 }
 0x2ac   :  { %v335_v2 = vadd.f32 %v414_v0, %v334_v1  ;;  %v525_v3 = vpop.f32.mrb[3].mxu0 }
 0x2ae   :  { %338 = vst [vmem:[#allocation7] sm:$0xff] %v335_v2  ;;  %v342_v4 = vsel %vm341_vm3, %v335_v2, -inf }
 0x2af   :  { %343 = vmax.xlane.f32.xlu0 %v342_v4 }
 0x33c   :  { %v344_v5 = vpop.xlane.xlu0 %343 }
 0x33d   :  { %v345_v6 = vsub.f32 %v342_v4, %v344_v5 }
 0x33f   :  { %v346_v7 = vmul.f32 1.442695, %v345_v6 }
 0x341   :  { %585 = vpow2.f32 %v346_v7 }
 0x34b   :  { %v586_v8 = vpop.eup %585 }
 0x34c   :  { %348 = vadd.xlane.f32.xlu0 %v586_v8 }
 0x34d   :  { %644 = shalt.err (!%p641_p6)
}
 0x34e   :  { %s645_s27 = scalar_lea.hbm %s910_s7, 128 }
 0x34f   :  { %p646_p7 = scmp.ne.s32.totalorder %s910_s7, %s645_s27  ;;  %p649_p8 = scmp.lt.u32.totalorder %s645_s27, %s910_s7 }
 0x351   :  { %p651_p9 = pnand %p649_p8, %p646_p7 }
 0x353   :  { %654 = shalt.err (!%p651_p9)
}
 0x354   :  { %362 = dma.vmem_to_hbm [thread:$0]  %s360_s24, 128, %s910_s7, [#allocation4]  }
 0x355   :  { %s739_s15 = smov [#allocation11]  }
 0x356   :  { %s389_s16 = sshll.u32 %s739_s15, 4  ;;  %s390_s16 = int_to_ptr.vmem [resolvable:$true] %s389_s16 }
 0x357   :  { %s655_s17 = scalar_lea.vmem %s390_s16, 128  ;;  %p660_p11 = scmp.lt.s32.totalorder %s390_s16, %s390_s16 }
 0x358   :  { %p656_p10 = scmp.ne.s32.totalorder %s390_s16, %s655_s17  ;;  %p661_p12 = scmp.lt.s32.totalorder %s655_s17, %s655_s17 }
 0x35a   :  { %p662_p13 = por %p661_p12, %p660_p11 }
 0x35c   :  { %p663_p0 = pnand %p662_p13, %p656_p10 }
 0x35e   :  { %666 = shalt.err (!%p663_p0)
}
 0x35f   :  { %s667_s18 = scalar_lea.hbm %s913_s10, 128 }
 0x360   :  { %p668_p1 = scmp.ne.s32.totalorder %s913_s10, %s667_s18  ;;  %p671_p2 = scmp.lt.u32.totalorder %s667_s18, %s913_s10 }
 0x362   :  { %p673_p3 = pnand %p671_p2, %p668_p1 }
 0x364   :  { %676 = shalt.err (!%p673_p3)
}
 0x365   :  { %392 = dma.vmem_to_hbm [thread:$0]  %s390_s16, 128, %s913_s10, [#allocation12]  }
 0x366   :  { %s740_s21 = smov [#allocation8]   ;;  %s741_s2 = smov [#allocation10]  }
 0x367   :  { %s369_s22 = sshll.u32 %s740_s21, 4  ;;  %s379_s23 = sshll.u32 %s741_s2, 4  ;;  %s370_s22 = int_to_ptr.vmem [resolvable:$true] %s369_s22  ;;  %s380_s23 = int_to_ptr.vmem [resolvable:$true] %s379_s23 }
 0x368   :  { %s677_s4 = scalar_lea.vmem %s370_s22, 128  ;;  %p682_p5 = scmp.lt.s32.totalorder %s370_s22, %s370_s22 }
 0x369   :  { %p678_p4 = scmp.ne.s32.totalorder %s370_s22, %s677_s4  ;;  %p683_p6 = scmp.lt.s32.totalorder %s677_s4, %s677_s4 }
 0x36b   :  { %p684_p7 = por %p683_p6, %p682_p5 }
 0x36d   :  { %p685_p8 = pnand %p684_p7, %p678_p4 }
 0x3d9   :  { %v349_v9 = vpop.xlane.xlu0 %348 }
 0x3da   :  { %587 = vrcp.f32 %v349_v9 }
 0x3e4   :  { %v588_v10 = vpop.eup %587 }
 0x3e5   :  { %v351_v11 = vmul.f32 %v588_v10, %v586_v8 }
 0x3e7   :  { %352 = vst [vmem:[#allocation8] sm:$0xff] %v351_v11 }
 0x3e8   :  { %688 = shalt.err (!%p685_p8)
}
 0x3e9   :  { %s689_s25 = scalar_lea.hbm %s911_s8, 128 }
 0x3ea   :  { %p690_p9 = scmp.ne.s32.totalorder %s911_s8, %s689_s25  ;;  %p693_p10 = scmp.lt.u32.totalorder %s689_s25, %s911_s8 }
 0x3ec   :  { %p695_p11 = pnand %p693_p10, %p690_p9 }
 0x3ee   :  { %698 = shalt.err (!%p695_p11)
}
 0x3ef   :  { %372 = dma.vmem_to_hbm [thread:$0]  %s370_s22, 128, %s911_s8, [#allocation9]  }
 0x3f0   :  { %s699_s11 = scalar_lea.vmem %s380_s23, 128  ;;  %p704_p13 = scmp.lt.s32.totalorder %s380_s23, %s380_s23 }
 0x3f1   :  { %p700_p12 = scmp.ne.s32.totalorder %s380_s23, %s699_s11  ;;  %p705_p0 = scmp.lt.s32.totalorder %s699_s11, %s699_s11 }
 0x3f3   :  { %p706_p1 = por %p705_p0, %p704_p13 }
 0x3f5   :  { %p707_p2 = pnand %p706_p1, %p700_p12 }
 0x3f7   :  { %710 = shalt.err (!%p707_p2)
}
 0x3f8   :  { %s711_s15 = scalar_lea.hbm %s912_s9, 128 }
 0x3f9   :  { %p712_p3 = scmp.ne.s32.totalorder %s912_s9, %s711_s15  ;;  %p715_p4 = scmp.lt.u32.totalorder %s711_s15, %s912_s9 }
 0x3fb   :  { %p717_p5 = pnand %p715_p4, %p712_p3 }
 0x3fd   :  { %720 = shalt.err (!%p717_p5)
}
 0x3fe   :  { %382 = dma.vmem_to_hbm [thread:$0]  %s380_s23, 128, %s912_s9, [#allocation9]  }
 0x3ff   :  { %725 = dma.done.wait [#allocation4], 128  }
 0x400   :  { %726 = vsyncadd [#allocation4], 4294967168 }
 0x401   :  { %727 = dma.done.wait [#allocation9], 256  }
 0x402   :  { %728 = vsyncadd [#allocation9], 4294967040 }
 0x403   :  { %729 = dma.done.wait [#allocation12], 128  }
 0x404   :  { %730 = vsyncadd [#allocation12], 4294967168 }
 0x405   :  { %405 = vsyncpa [#allocation3], 1 }
 0x406   :  { %406 = vsyncpa [#allocation6], 1 }
 0x407   :  { %407 = vsyncpa [#allocation4], 1 }
 0x408   :  { %408 = vsyncpa [#allocation9], 1 }
 0x409   :  { %409 = vsyncpa [#allocation12], 1 }

</bundles_post_ra>
